<compile_context>
chip_gen: v5e
topology: v5e:2x2
jax: 0.10.0
libtpu: 0.0.40
codegen_flags: <defaults>
</compile_context>

<pallas_src>
import jax
import jax.numpy as jnp
from jax.experimental import pallas as pl
from jax.experimental.pallas import tpu as pltpu

_LANE = 128


def _round_up(x, m):
    return ((x + m - 1) // m) * m


def _cdiv(a, b):
    return -(-a // b)


def _choose_tiling(batch, tile_cap):
    """Pick (tile_b, b_pad) with tile_b a multiple of 128 on the lane axis.

    Small batches get a single 128/256-wide tile.  Larger batches get an even
    number of grid steps (>= 2) so both v7x TensorCores receive balanced work,
    with the tile shrunk to balance the steps and bound padding waste.
    """
    tile_cap = max(_LANE, (tile_cap // _LANE) * _LANE)
    if batch <= 2 * _LANE:
        tile = _round_up(max(batch, 1), _LANE)
        return tile, tile
    steps = max(2, _cdiv(batch, tile_cap))
    steps += steps % 2                      # even step count -> megacore balance
    tile = min(tile_cap, _round_up(_cdiv(batch, steps), _LANE))
    b_pad = _round_up(batch, tile)
    return tile, b_pad


def critic_kernel(x_ref, w1_ref, b1_ref, w2_ref, b2_ref, w3_ref, b3_ref, o_ref):
    # x_ref : (D, tile_b)    f32   batch on the lane axis
    # w1_ref: (fc1, D)       bf16  resident
    # b1_ref: (fc1, 1)       f32   resident
    # w2_ref: (fc2, fc1)     bf16  resident
    # b2_ref: (fc2, 1)       f32   resident
    # w3_ref: (fc2, 1)       f32   resident
    # b3_ref: (1, 1)         f32   resident
    # o_ref : (1, tile_b)    f32   lane-dense value row
    x = x_ref[...].astype(jnp.bfloat16)

    # Layer 1: bf16 MXU matmul, f32 accumulation; bias + ReLU in f32 (VPU).
    h1 = jnp.dot(w1_ref[...], x, preferred_element_type=jnp.float32) + b1_ref[...]
    h1 = jnp.maximum(h1, 0.0)

    # Layer 2: the main 256x256 MXU matmul, bf16 operands, f32 accumulation.
    h2 = jnp.dot(w2_ref[...], h1.astype(jnp.bfloat16),
                 preferred_element_type=jnp.float32) + b2_ref[...]
    h2 = jnp.maximum(h2, 0.0)

    # Layer 3 (single output unit): VPU multiply + sublane reduction yields the
    # lane-dense (1, tile_b) row directly (no MXU pass, no relayout).
    # TODO(synk): per review, compare bundle vex counts against an MXU dot for
    # this N=1 layer on v6e/v7x and pick the cheaper one from the dump.
    v = jnp.sum(h2 * w3_ref[...], axis=0, keepdims=True) + b3_ref[...]
    o_ref[...] = v.astype(o_ref.dtype)


def critic_forward(state, params, tile_cap=2048):
    """Fused 3-layer MLP critic.  state: [B, D] float32 -> [B, 1] float32."""
    w1, b1, w2, b2, w3, b3 = params       # [in, out] layout, float32
    B, D = state.shape
    fc1 = w1.shape[1]
    fc2 = w2.shape[1]

    tile_b, b_pad = _choose_tiling(B, tile_cap)
    grid = (b_pad // tile_b,)

    # Layout plumbing in the wrapper: batch on the lane axis, weights feeding
    # the MXU in bf16.  Biases / output head stay f32.
    xt = state.T                                   # (D, B)
    if b_pad != B:
        xt = jnp.pad(xt, ((0, 0), (0, b_pad - B)))
    w1t = w1.T.astype(jnp.bfloat16)                # (fc1, D)
    w2t = w2.T.astype(jnp.bfloat16)                # (fc2, fc1)
    b1t = b1.reshape(fc1, 1).astype(jnp.float32)
    b2t = b2.reshape(fc2, 1).astype(jnp.float32)
    w3c = w3.reshape(fc2, 1).astype(jnp.float32)
    b3c = b3.reshape(1, 1).astype(jnp.float32)

    # Constant index_map -> operand stays resident in VMEM across the grid.
    def resident(a):
        return pl.BlockSpec(a.shape, lambda i: (0,) * a.ndim)

    flops = 2 * b_pad * (D * fc1 + fc1 * fc2 + fc2)
    bytes_accessed = (
        xt.size * 4
        + (w1t.size + w2t.size) * 2
        + (b1t.size + b2t.size + w3c.size + b3c.size) * 4
        + b_pad * 4
    )

    out = pl.pallas_call(
        critic_kernel,
        out_shape=jax.ShapeDtypeStruct((1, b_pad), jnp.float32),
        grid=grid,
        in_specs=[
            pl.BlockSpec((D, tile_b), lambda i: (0, i)),   # state tile (lane-dense)
            resident(w1t), resident(b1t),
            resident(w2t), resident(b2t),
            resident(w3c), resident(b3c),
        ],
        out_specs=pl.BlockSpec((1, tile_b), lambda i: (0, i)),
        compiler_params=pltpu.CompilerParams(
            dimension_semantics=("parallel",),
        ),
        cost_estimate=pl.CostEstimate(
            flops=flops, transcendentals=0, bytes_accessed=bytes_accessed,
        ),
    )(xt, w1t, b1t, w2t, b2t, w3c, b3c)

    return out[0, :B].reshape(B, 1)


def init_params(key, input_dims, fc1_dims=256, fc2_dims=256):
    """Deterministic init mimicking PyTorch Linear default (U(-1/sqrt(in), 1/sqrt(in))).
    Weights stored as [in, out] (transposed vs. PyTorch's [out, in])."""
    ks = jax.random.split(key, 6)

    def lin(kw, kb, fan_in, fan_out):
        bound = 1.0 / jnp.sqrt(jnp.float32(fan_in))
        w = jax.random.uniform(kw, (fan_in, fan_out), jnp.float32, -bound, bound)
        b = jax.random.uniform(kb, (1, fan_out), jnp.float32, -bound, bound)
        return w, b

    w1, b1 = lin(ks[0], ks[1], input_dims, fc1_dims)
    w2, b2 = lin(ks[2], ks[3], fc1_dims, fc2_dims)
    w3, b3 = lin(ks[4], ks[5], fc2_dims, 1)
    return (w1, b1, w2, b2, w3, b3)


def critic_reference(state, params):
    w1, b1, w2, b2, w3, b3 = params
    h1 = jnp.maximum(state @ w1 + b1, 0.0)
    h2 = jnp.maximum(h1 @ w2 + b2, 0.0)
    return h2 @ w3 + b3


if __name__ == "__main__":
    key = jax.random.PRNGKey(0)
    k_params, k1, k2, k3 = jax.random.split(key, 4)

    input_dims = 8          # observation dim for the sinewave env
    params = init_params(k_params, input_dims)

    # bf16 matmuls with f32 accumulation: ~1e-2-level agreement vs f32 reference.
    TOL = dict(atol=2e-2, rtol=2e-2)

    # Small demo batch (single 128-wide tile).
    batch = 8
    state = jax.random.normal(k1, (batch, input_dims), jnp.float32)
    value = jax.block_until_ready(critic_forward(state, params))
    ref = critic_reference(state, params)
    assert value.shape == (batch, 1)
    assert jnp.allclose(value, ref, **TOL)

    # Non-tile-aligned batch: exercises the 2-step grid, resident weights,
    # megacore-friendly even step count, and the pad-and-slice path.
    batch2 = 300
    state2 = jax.random.normal(k2, (batch2, input_dims), jnp.float32)
    value2 = jax.block_until_ready(critic_forward(state2, params))
    ref2 = critic_reference(state2, params)
    assert value2.shape == (batch2, 1)
    assert jnp.allclose(value2, ref2, **TOL)

    # Larger PPO-style batch: exercises the big-tile path under the 2048 cap.
    batch3 = 2500
    state3 = jax.random.normal(k3, (batch3, input_dims), jnp.float32)
    value3 = jax.block_until_ready(critic_forward(state3, params))
    ref3 = critic_reference(state3, params)
    assert value3.shape == (batch3, 1)
    assert jnp.allclose(value3, ref3, **TOL)

    print("KERNEL_OK")
</pallas_src>

<mosaic_0001>
module attributes {stable_mosaic.version = 11 : i64} {
  func.func @critic_kernel(%arg0: i32, %arg1: memref<8x128xf32, #tpu.memory_space<vmem>>, %arg2: memref<256x8xbf16, #tpu.memory_space<vmem>>, %arg3: memref<256x1xf32, #tpu.memory_space<vmem>>, %arg4: memref<256x256xbf16, #tpu.memory_space<vmem>>, %arg5: memref<256x1xf32, #tpu.memory_space<vmem>>, %arg6: memref<256x1xf32, #tpu.memory_space<vmem>>, %arg7: memref<1x1xf32, #tpu.memory_space<vmem>>, %arg8: memref<1x128xf32, #tpu.memory_space<vmem>>) attributes {dimension_semantics = [#tpu.dimension_semantics<parallel>], iteration_bounds = array<i64: 1>, scalar_prefetch = 0 : i64, scratch_operands = 0 : i64, tpu.core_type = #tpu.core_type<tc>, window_params = [{transform_indices = @transform_0, window_bounds = array<i64: 8, 128>}, {pipeline_mode = #tpu.pipeline_mode<synchronous>, transform_indices = @transform_1, window_bounds = array<i64: 256, 8>}, {pipeline_mode = #tpu.pipeline_mode<synchronous>, transform_indices = @transform_2, window_bounds = array<i64: 256, 1>}, {pipeline_mode = #tpu.pipeline_mode<synchronous>, transform_indices = @transform_3, window_bounds = array<i64: 256, 256>}, {pipeline_mode = #tpu.pipeline_mode<synchronous>, transform_indices = @transform_4, window_bounds = array<i64: 256, 1>}, {pipeline_mode = #tpu.pipeline_mode<synchronous>, transform_indices = @transform_5, window_bounds = array<i64: 256, 1>}, {pipeline_mode = #tpu.pipeline_mode<synchronous>, transform_indices = @transform_6, window_bounds = array<i64: 1, 1>}, {transform_indices = @transform_7, window_bounds = array<i64: 1, 128>}]} {
    %c0 = arith.constant 0 : index
    %c0_0 = arith.constant 0 : index
    %0 = vector.load %arg1[%c0, %c0_0] : memref<8x128xf32, #tpu.memory_space<vmem>>, vector<8x128xf32>
    %1 = arith.truncf %0 : vector<8x128xf32> to vector<8x128xbf16>
    %c0_1 = arith.constant 0 : index
    %c0_2 = arith.constant 0 : index
    %2 = vector.load %arg2[%c0_1, %c0_2] : memref<256x8xbf16, #tpu.memory_space<vmem>>, vector<256x8xbf16>
    %cst = arith.constant dense<0.000000e+00> : vector<256x128xf32>
    %3 = tpu.matmul %2, %1, %cst {dimension_numbers = #tpu.dot_dimension_numbers<[1], [0], [0], [1], [0, 0, 1, 1], [], []>} : vector<256x8xbf16>, vector<8x128xbf16>, vector<256x128xf32> -> vector<256x128xf32>
    %c0_3 = arith.constant 0 : index
    %c0_4 = arith.constant 0 : index
    %4 = vector.load %arg3[%c0_3, %c0_4] : memref<256x1xf32, #tpu.memory_space<vmem>>, vector<256x1xf32>
    %5 = vector.broadcast %4 : vector<256x1xf32> to vector<256x128xf32>
    %6 = arith.addf %3, %5 : vector<256x128xf32>
    %cst_5 = arith.constant 0.000000e+00 : f32
    %7 = vector.broadcast %cst_5 : f32 to vector<256x128xf32>
    %8 = arith.maximumf %6, %7 : vector<256x128xf32>
    %c0_6 = arith.constant 0 : index
    %c0_7 = arith.constant 0 : index
    %9 = vector.load %arg4[%c0_6, %c0_7] : memref<256x256xbf16, #tpu.memory_space<vmem>>, vector<256x256xbf16>
    %10 = arith.truncf %8 : vector<256x128xf32> to vector<256x128xbf16>
    %cst_8 = arith.constant dense<0.000000e+00> : vector<256x128xf32>
    %11 = tpu.matmul %9, %10, %cst_8 {dimension_numbers = #tpu.dot_dimension_numbers<[1], [0], [0], [1], [0, 0, 1, 1], [], []>} : vector<256x256xbf16>, vector<256x128xbf16>, vector<256x128xf32> -> vector<256x128xf32>
    %c0_9 = arith.constant 0 : index
    %c0_10 = arith.constant 0 : index
    %12 = vector.load %arg5[%c0_9, %c0_10] : memref<256x1xf32, #tpu.memory_space<vmem>>, vector<256x1xf32>
    %13 = vector.broadcast %12 : vector<256x1xf32> to vector<256x128xf32>
    %14 = arith.addf %11, %13 : vector<256x128xf32>
    %cst_11 = arith.constant 0.000000e+00 : f32
    %15 = vector.broadcast %cst_11 : f32 to vector<256x128xf32>
    %16 = arith.maximumf %14, %15 : vector<256x128xf32>
    %c0_12 = arith.constant 0 : index
    %c0_13 = arith.constant 0 : index
    %17 = vector.load %arg6[%c0_12, %c0_13] : memref<256x1xf32, #tpu.memory_space<vmem>>, vector<256x1xf32>
    %18 = vector.broadcast %17 : vector<256x1xf32> to vector<256x128xf32>
    %19 = arith.mulf %16, %18 : vector<256x128xf32>
    %cst_14 = arith.constant dense<0.000000e+00> : vector<128xf32>
    %20 = vector.multi_reduction <add>, %19, %cst_14 [0] : vector<256x128xf32> to vector<128xf32>
    %21 = vector.shape_cast %20 : vector<128xf32> to vector<1x128xf32>
    %c0_15 = arith.constant 0 : index
    %c0_16 = arith.constant 0 : index
    %22 = vector.load %arg7[%c0_15, %c0_16] : memref<1x1xf32, #tpu.memory_space<vmem>>, vector<1x1xf32>
    %23 = vector.broadcast %22 : vector<1x1xf32> to vector<1x128xf32>
    %24 = arith.addf %21, %23 : vector<1x128xf32>
    %c0_17 = arith.constant 0 : index
    %c0_18 = arith.constant 0 : index
    %25 = vector.load %arg8[%c0_17, %c0_18] : memref<1x128xf32, #tpu.memory_space<vmem>>, vector<1x128xf32>
    tpu.vector_store %arg8[%c0_17, %c0_18], %24 {strides = array<i32>} : memref<1x128xf32, #tpu.memory_space<vmem>>, vector<1x128xf32>,
    return
  }
  func.func @transform_0(%arg0: i32) -> (i32, i32) {
    %c0_i32 = arith.constant 0 : i32
    %c0_i32_0 = arith.constant 0 : i32
    return %c0_i32, %arg0 : i32, i32
  }
  func.func @transform_1(%arg0: i32) -> (i32, i32) {
    %c0_i32 = arith.constant 0 : i32
    %c0_i32_0 = arith.constant 0 : i32
    %c0_i32_1 = arith.constant 0 : i32
    return %c0_i32, %c0_i32_0 : i32, i32
  }
  func.func @transform_2(%arg0: i32) -> (i32, i32) {
    %c0_i32 = arith.constant 0 : i32
    %c0_i32_0 = arith.constant 0 : i32
    %c0_i32_1 = arith.constant 0 : i32
    return %c0_i32, %c0_i32_0 : i32, i32
  }
  func.func @transform_3(%arg0: i32) -> (i32, i32) {
    %c0_i32 = arith.constant 0 : i32
    %c0_i32_0 = arith.constant 0 : i32
    %c0_i32_1 = arith.constant 0 : i32
    return %c0_i32, %c0_i32_0 : i32, i32
  }
  func.func @transform_4(%arg0: i32) -> (i32, i32) {
    %c0_i32 = arith.constant 0 : i32
    %c0_i32_0 = arith.constant 0 : i32
    %c0_i32_1 = arith.constant 0 : i32
    return %c0_i32, %c0_i32_0 : i32, i32
  }
  func.func @transform_5(%arg0: i32) -> (i32, i32) {
    %c0_i32 = arith.constant 0 : i32
    %c0_i32_0 = arith.constant 0 : i32
    %c0_i32_1 = arith.constant 0 : i32
    return %c0_i32, %c0_i32_0 : i32, i32
  }
  func.func @transform_6(%arg0: i32) -> (i32, i32) {
    %c0_i32 = arith.constant 0 : i32
    %c0_i32_0 = arith.constant 0 : i32
    %c0_i32_1 = arith.constant 0 : i32
    return %c0_i32, %c0_i32_0 : i32, i32
  }
  func.func @transform_7(%arg0: i32) -> (i32, i32) {
    %c0_i32 = arith.constant 0 : i32
    %c0_i32_0 = arith.constant 0 : i32
    return %c0_i32, %arg0 : i32, i32
  }
}

</mosaic_0001>

<bundles_post_ra>
// kernel: tpu_custom_call.1
= control target key start
LH: loop header
LB: loop body
LE: loop exit
PB: predicated region body
PF: predicated region fallthrough
CT: control target
= control target key end

     0   :  { %s2551_s0 = inlined_call_operand.vmem [shape: f32[8,128], index: 0, kind: input, shape index: {}]   ;;  %s2552_s1 = inlined_call_operand.vmem [shape: bf16[256,8], index: 1, kind: input, shape index: {}]   ;;  %s2553_s2 = inlined_call_operand.vmem [shape: f32[256,1], index: 2, kind: input, shape index: {}]   ;;  %s2554_s3 = inlined_call_operand.vmem [shape: bf16[256,256], index: 3, kind: input, shape index: {}]   ;;  %s2555_s4 = inlined_call_operand.vmem [shape: f32[256,1], index: 4, kind: input, shape index: {}]   ;;  %s2556_s5 = inlined_call_operand.vmem [shape: f32[256,1], index: 5, kind: input, shape index: {}]   ;;  %s2557_s6 = inlined_call_operand.<no memory space> [shape: f32[1,1], index: 6, kind: input, shape index: {}]   ;;  %s2558_s7 = inlined_call_operand.hbm [shape: f32[1,128], index: 7, kind: output, shape index: {}]  }
   0x1   :  { %v12_v0 = vstv %s2557_s6 }
   0x2   :  { %13 = vst [vmem:[#allocation2] sm:$0x1] %v12_v0 }
   0x3   :  { %v68_v1 = vld [vmem:[%s2553_s2 + $0x20] sm:$0xff]  ;;  %v66_v2 = vld [vmem:[%s2553_s2 + $0x10] sm:$0xff]  ;;  %v1710_v4 = vmov 0   ;;  %vm385_vm0 = vcmask 1043456   ;;  %vm336_vm1 = vcmask 64512  }
   0x4   :  { %v64_v3 = vld [vmem:[%s2553_s2] sm:$0xff]  ;;  %1683 = vset.pattern.permute.xlu2 %v1710_v4  ;;  %1682 = vset.pattern.permute.xlu1 %v1710_v4 }
   0x5   :  { %v30_v5 = vld [vmem:[%s2551_s0] sm:$0xff]  ;;  %1681 = vset.pattern.permute.xlu0 %v1710_v4  ;;  %118 = vperm.xlu2 %1683, %v68_v1  }
   0x6   :  { %v31_v6 = vpack.c.bf16 %v30_v5, %v30_v5  ;;  %108 = vperm.xlu1 %1682, %v66_v2   ;;  %98 = vperm.xlu0 %1681, %v64_v3   ;;  %v1614_v8 = vld [vmem:[%s2552_s1] sm:$0xff] }
   0x8   :  { %v387_v7 = vsel %vm385_vm0, %v31_v6, 0 }
   0x9   :  { %396 = vmatpush.bf16.msra.mxu0 %v387_v7  ;;  %1662 = vmatpush.bf16.msra.mxu3 %v387_v7 }
   0xa   :  { %14 = vsyncpa [#allocation4], 0  ;;  %v69_v9 = vld [vmem:[%s2553_s2 + $0x28] sm:$0xff]  ;;  %v67_v10 = vld [vmem:[%s2553_s2 + $0x18] sm:$0xff]  ;;  %s1397_s30 = sshll.u32 %s2558_s7, 4  ;;  %s1398_s30 = int_to_ptr.hbm [resolvable:$true] %s1397_s30 }
   0xb   :  { %v65_v11 = vld [vmem:[%s2553_s2 + $0x8] sm:$0xff]  ;;  %v72_v12 = vld [vmem:[%s2553_s2 + $0x40] sm:$0xff]  ;;  %v71_v13 = vld [vmem:[%s2553_s2 + $0x38] sm:$0xff] }
   0xc   :  { %1470 = vmatmul.msk.bf16.vlgmr.msra.gmra.mxu0 %vm336_vm1, %v1614_v8  ;;  %v70_v14 = vld [vmem:[%s2553_s2 + $0x30] sm:$0xff]  ;;  %v1615_v15 = vld [vmem:[%s2552_s1 + $0x8] sm:$0xff]  ;;  %v75_v16 = vld [vmem:[%s2553_s2 + $0x58] sm:$0xff] }
   0xd   :  { %123 = vperm.xlu2 %1683, %v69_v9   ;;  %v74_v17 = vld [vmem:[%s2553_s2 + $0x50] sm:$0xff]  ;;  %v73_v18 = vld [vmem:[%s2553_s2 + $0x48] sm:$0xff]  ;;  %v76_v21 = vld [vmem:[%s2553_s2 + $0x60] sm:$0xff] }
   0xe   :  { %113 = vperm.xlu1 %1682, %v67_v10   ;;  %103 = vperm.xlu0 %1681, %v65_v11   ;;  %v78_v19 = vld [vmem:[%s2553_s2 + $0x70] sm:$0xff]  ;;  %v77_v20 = vld [vmem:[%s2553_s2 + $0x68] sm:$0xff]  ;;  %v80_v25 = vld [vmem:[%s2553_s2 + $0x80] sm:$0xff] }
   0xf   :  { %v1627_v22 = vld [vmem:[%s2552_s1 + $0x68] sm:$0xff]  ;;  %v1616_v23 = vld [vmem:[%s2552_s1 + $0x10] sm:$0xff]  ;;  %v79_v26 = vld [vmem:[%s2553_s2 + $0x78] sm:$0xff] }
  0x10   :  { %1483 = vmatmul.msk.bf16.vlgmr.msra.gmra.mxu3 %vm336_vm1, %v1627_v22  ;;  %v81_v24 = vld [vmem:[%s2553_s2 + $0x88] sm:$0xff]  ;;  %v84_v27 = vld [vmem:[%s2553_s2 + $0xa0] sm:$0xff]  ;;  %v83_v28 = vld [vmem:[%s2553_s2 + $0x98] sm:$0xff] }
  0x11   :  { %v82_v29 = vld [vmem:[%s2553_s2 + $0x90] sm:$0xff]  ;;  %v1617_v31 = vld [vmem:[%s2552_s1 + $0x18] sm:$0xff]  ;;  %v85_v34 = vld [vmem:[%s2553_s2 + $0xa8] sm:$0xff] }
  0x12   :  { %v1628_v30 = vld [vmem:[%s2552_s1 + $0x70] sm:$0xff]  ;;  %v87_v32 = vld [vmem:[%s2553_s2 + $0xb8] sm:$0xff]  ;;  %v89_v36 = vld [vmem:[%s2553_s2 + $0xc8] sm:$0xff] }
  0x13   :  { %v86_v33 = vld [vmem:[%s2553_s2 + $0xb0] sm:$0xff]  ;;  %v88_v37 = vld [vmem:[%s2553_s2 + $0xc0] sm:$0xff]  ;;  %v1629_v39 = vld [vmem:[%s2552_s1 + $0x78] sm:$0xff] }
  0x14   :  { %v94_v35 = vld [vmem:[%s2553_s2 + $0xf0] sm:$0xff]  ;;  %v1618_v38 = vld [vmem:[%s2552_s1 + $0x20] sm:$0xff]  ;;  %v93_v40 = vld [vmem:[%s2553_s2 + $0xe8] sm:$0xff] }
  0x15   :  { %138 = vperm.xlu2 %1683, %v72_v12   ;;  %v92_v41 = vld [vmem:[%s2553_s2 + $0xe0] sm:$0xff]  ;;  %v95_v42 = vld [vmem:[%s2553_s2 + $0xf8] sm:$0xff]  ;;  %v90_v45 = vld [vmem:[%s2553_s2 + $0xd0] sm:$0xff] }
  0x16   :  { %133 = vperm.xlu1 %1682, %v71_v13   ;;  %128 = vperm.xlu0 %1681, %v70_v14   ;;  %v558_v43 = vld [vmem:[%s2555_s4] sm:$0xff]  ;;  %v91_v44 = vld [vmem:[%s2553_s2 + $0xd8] sm:$0xff]  ;;  %v1619_v46 = vld [vmem:[%s2552_s1 + $0x28] sm:$0xff] }
  0x17   :  { %v561_v47 = vld [vmem:[%s2555_s4 + $0x18] sm:$0xff]  ;;  %v560_v48 = vld [vmem:[%s2555_s4 + $0x10] sm:$0xff]  ;;  %v559_v49 = vld [vmem:[%s2555_s4 + $0x8] sm:$0xff] }
  0x18   :  { %v564_v50 = vld [vmem:[%s2555_s4 + $0x30] sm:$0xff]  ;;  %v563_v51 = vld [vmem:[%s2555_s4 + $0x28] sm:$0xff]  ;;  %v562_v52 = vld [vmem:[%s2555_s4 + $0x20] sm:$0xff] }
  0x19   :  { %v1620_v53 = vld [vmem:[%s2552_s1 + $0x30] sm:$0xff]  ;;  %v567_v54 = vld [vmem:[%s2555_s4 + $0x48] sm:$0xff]  ;;  %v566_v55 = vld [vmem:[%s2555_s4 + $0x40] sm:$0xff] }
  0x1a   :  { %v565_v56 = vld [vmem:[%s2555_s4 + $0x38] sm:$0xff]  ;;  %v570_v57 = vld [vmem:[%s2555_s4 + $0x60] sm:$0xff]  ;;  %v568_v59 = vld [vmem:[%s2555_s4 + $0x50] sm:$0xff] }
  0x1b   :  { %v569_v58 = vld [vmem:[%s2555_s4 + $0x58] sm:$0xff]  ;;  %v572_v1 = vld [vmem:[%s2555_s4 + $0x70] sm:$0xff]  ;;  %v571_v2 = vld [vmem:[%s2555_s4 + $0x68] sm:$0xff] }
  0x1c   :  { %1471 = vmatmul.msk.bf16.gmra.mxu0 %vm336_vm1, %v1615_v15  ;;  %v1621_v60 = vld [vmem:[%s2552_s1 + $0x38] sm:$0xff]  ;;  %v576_v5 = vld [vmem:[%s2555_s4 + $0x90] sm:$0xff]  ;;  %v575_v6 = vld [vmem:[%s2555_s4 + $0x88] sm:$0xff] }
  0x1d   :  { %153 = vperm.xlu2 %1683, %v75_v16   ;;  %v573_v63 = vld [vmem:[%s2555_s4 + $0x78] sm:$0xff]  ;;  %v574_v7 = vld [vmem:[%s2555_s4 + $0x80] sm:$0xff]  ;;  %v579_v14 = vld [vmem:[%s2555_s4 + $0xa8] sm:$0xff] }
  0x1e   :  { %148 = vperm.xlu1 %1682, %v74_v17   ;;  %143 = vperm.xlu0 %1681, %v73_v18   ;;  %v1622_v9 = vld [vmem:[%s2552_s1 + $0x40] sm:$0xff]  ;;  %v577_v16 = vld [vmem:[%s2555_s4 + $0x98] sm:$0xff] }
  0x1f   :  { %v578_v15 = vld [vmem:[%s2555_s4 + $0xa0] sm:$0xff] }
  0x20   :  { %1484 = vmatmul.msk.bf16.gmra.mxu3 %vm336_vm1, %v1628_v30 }
  0x25   :  { %168 = vperm.xlu2 %1683, %v78_v19  }
  0x26   :  { %163 = vperm.xlu1 %1682, %v77_v20   ;;  %158 = vperm.xlu0 %1681, %v76_v21   ;;  %v582_v21 = vld [vmem:[%s2555_s4 + $0xc0] sm:$0xff] }
  0x2c   :  { %1472 = vmatmul.msk.bf16.gmra.mxu0 %vm336_vm1, %v1616_v23  ;;  %v581_v23 = vld [vmem:[%s2555_s4 + $0xb8] sm:$0xff] }
  0x2d   :  { %183 = vperm.xlu2 %1683, %v81_v24   ;;  %v580_v24 = vld [vmem:[%s2555_s4 + $0xb0] sm:$0xff] }
  0x2e   :  { %178 = vperm.xlu1 %1682, %v80_v25   ;;  %173 = vperm.xlu0 %1681, %v79_v26  }
  0x30   :  { %1485 = vmatmul.msk.bf16.gmra.mxu3 %vm336_vm1, %v1629_v39  ;;  %v588_v39 = vld [vmem:[%s2555_s4 + $0xf0] sm:$0xff] }
  0x35   :  { %198 = vperm.xlu2 %1683, %v84_v27  }
  0x36   :  { %193 = vperm.xlu1 %1682, %v83_v28   ;;  %188 = vperm.xlu0 %1681, %v82_v29   ;;  %v1623_v28 = vld [vmem:[%s2552_s1 + $0x48] sm:$0xff] }
  0x3c   :  { %1473 = vmatmul.msk.bf16.gmra.mxu0 %vm336_vm1, %v1617_v31 }
  0x3d   :  { %213 = vperm.xlu2 %1683, %v87_v32   ;;  %v585_v32 = vld [vmem:[%s2555_s4 + $0xd8] sm:$0xff] }
  0x3e   :  { %208 = vperm.xlu1 %1682, %v86_v33   ;;  %203 = vperm.xlu0 %1681, %v85_v34   ;;  %v584_v33 = vld [vmem:[%s2555_s4 + $0xd0] sm:$0xff]  ;;  %v583_v34 = vld [vmem:[%s2555_s4 + $0xc8] sm:$0xff] }
  0x45   :  { %248 = vperm.xlu2 %1683, %v94_v35  }
  0x46   :  { %223 = vperm.xlu1 %1682, %v89_v36   ;;  %218 = vperm.xlu0 %1681, %v88_v37  }
  0x4c   :  { %1474 = vmatmul.msk.bf16.gmra.mxu0 %vm336_vm1, %v1618_v38 }
  0x4d   :  { %243 = vperm.xlu2 %1683, %v93_v40  }
  0x4e   :  { %238 = vperm.xlu1 %1682, %v92_v41   ;;  %253 = vperm.xlu0 %1681, %v95_v42   ;;  %v587_v41 = vld [vmem:[%s2555_s4 + $0xe8] sm:$0xff]  ;;  %v586_v42 = vld [vmem:[%s2555_s4 + $0xe0] sm:$0xff] }
  0x55   :  { %592 = vperm.xlu2 %1683, %v558_v43  }
  0x56   :  { %233 = vperm.xlu1 %1682, %v91_v44   ;;  %228 = vperm.xlu0 %1681, %v90_v45  }
  0x5c   :  { %1475 = vmatmul.msk.bf16.gmra.mxu0 %vm336_vm1, %v1619_v46 }
  0x5d   :  { %607 = vperm.xlu2 %1683, %v561_v47  }
  0x5e   :  { %602 = vperm.xlu1 %1682, %v560_v48   ;;  %597 = vperm.xlu0 %1681, %v559_v49   ;;  %v1624_v48 = vld [vmem:[%s2552_s1 + $0x50] sm:$0xff] }
  0x5f   :  { %v1939_v0 = vpop.permute.xlu2 %118 }
  0x65   :  { %622 = vperm.xlu2 %1683, %v564_v50   ;;  %v1121_v50 = vld [vmem:[%s2556_s5 + $0x8] sm:$0xff] }
  0x66   :  { %617 = vperm.xlu1 %1682, %v563_v51   ;;  %612 = vperm.xlu0 %1681, %v562_v52   ;;  %v1120_v51 = vld [vmem:[%s2556_s5] sm:$0xff]  ;;  %v589_v52 = vld [vmem:[%s2555_s4 + $0xf8] sm:$0xff] }
  0x67   :  { %v1957_v8 = vpop.permute.xlu2 %123 }
  0x6c   :  { %1476 = vmatmul.msk.bf16.gmra.mxu0 %vm336_vm1, %v1620_v53 }
  0x6d   :  { %637 = vperm.xlu2 %1683, %v567_v54  }
  0x6e   :  { %632 = vperm.xlu1 %1682, %v566_v55   ;;  %627 = vperm.xlu0 %1681, %v565_v56  }
  0x6f   :  { %v1976_v17 = vpop.permute.xlu2 %138 }
  0x75   :  { %652 = vperm.xlu2 %1683, %v570_v57  }
  0x76   :  { %647 = vperm.xlu1 %1682, %v569_v58   ;;  %642 = vperm.xlu0 %1681, %v568_v59  }
  0x77   :  { %v1996_v29 = vpop.permute.xlu2 %153 }
  0x78   :  { %v109_v61 = vpop.permute.xlu1 %108  ;;  %v99_v62 = vpop.permute.xlu0 %98 }
  0x7c   :  { %1477 = vmatmul.msk.bf16.gmra.mxu0 %vm336_vm1, %v1621_v60  ;;  %v1124_v60 = vld [vmem:[%s2556_s5 + $0x20] sm:$0xff] }
  0x7d   :  { %667 = vperm.xlu2 %1683, %v573_v63  }
  0x7e   :  { %662 = vperm.xlu1 %1682, %v572_v1   ;;  %657 = vperm.xlu0 %1681, %v571_v2  }
  0x7f   :  { %v2015_v40 = vpop.permute.xlu2 %168 }
  0x80   :  { %v114_v3 = vpop.permute.xlu1 %113  ;;  %v104_v4 = vpop.permute.xlu0 %103 }
  0x85   :  { %682 = vperm.xlu2 %1683, %v576_v5  }
  0x86   :  { %677 = vperm.xlu1 %1682, %v575_v6   ;;  %672 = vperm.xlu0 %1681, %v574_v7  }
  0x87   :  { %v2044_v54 = vpop.permute.xlu2 %183 }
  0x88   :  { %v1962_v10 = vpop.permute.xlu1 %133  ;;  %v1964_v11 = vpop.permute.xlu0 %128 }
  0x89   :  { %v398_v12 = vpop.f32.mrf.mxu0 }
  0x8a   :  { %v399_v13 = vadd.f32 %v398_v12, %v99_v62  ;;  %v1122_v62 = vld [vmem:[%s2556_s5 + $0x10] sm:$0xff] }
  0x8b   :  { %v1126_v12 = vld [vmem:[%s2556_s5 + $0x30] sm:$0xff] }
  0x8c   :  { %1478 = vmatmul.msk.bf16.gmra.mxu0 %vm336_vm1, %v1622_v9  ;;  %v478_v25 = vmax.f32 %v399_v13, 0.0  ;;  %v1125_v13 = vld [vmem:[%s2556_s5 + $0x28] sm:$0xff] }
  0x8d   :  { %697 = vperm.xlu2 %1683, %v579_v14  }
  0x8e   :  { %692 = vperm.xlu1 %1682, %v578_v15   ;;  %687 = vperm.xlu0 %1681, %v577_v16  }
  0x90   :  { %v1978_v19 = vpop.permute.xlu1 %148  ;;  %v1983_v22 = vpop.permute.xlu0 %143 }
  0x91   :  { %v400_v18 = vpop.f32.mrf.mxu0 }
  0x92   :  { %v401_v20 = vadd.f32 %v400_v18, %v104_v4  ;;  %v1625_v4 = vld [vmem:[%s2552_s1 + $0x58] sm:$0xff]  ;;  %v1130_v18 = vld [vmem:[%s2556_s5 + $0x50] sm:$0xff] }
  0x93   :  { %v2042_v53 = vpop.f32.mrf.mxu3 }
  0x94   :  { %v479_v26 = vmax.f32 %v401_v20, 0.0  ;;  %v1129_v20 = vld [vmem:[%s2556_s5 + $0x48] sm:$0xff] }
  0x95   :  { %712 = vperm.xlu2 %1683, %v582_v21   ;;  %v1128_v21 = vld [vmem:[%s2556_s5 + $0x40] sm:$0xff] }
  0x96   :  { %707 = vperm.xlu1 %1682, %v581_v23   ;;  %702 = vperm.xlu0 %1681, %v580_v24   ;;  %v1991_v27 = vpack.c.bf16 %v479_v26, %v478_v25 }
  0x98   :  { %v2008_v35 = vpop.permute.xlu1 %163  ;;  %v2010_v36 = vpop.permute.xlu0 %158 }
  0x99   :  { %v403_v30 = vpop.f32.mrf.mxu0 }
  0x9a   :  { %v404_v31 = vadd.f32 %v403_v30, %v109_v61  ;;  %v1123_v61 = vld [vmem:[%s2556_s5 + $0x18] sm:$0xff]  ;;  %v1626_v30 = vld [vmem:[%s2552_s1 + $0x60] sm:$0xff] }
  0x9c   :  { %1479 = vmatmul.msk.bf16.gmra.mxu0 %vm336_vm1, %v1623_v28  ;;  %v480_v43 = vmax.f32 %v404_v31, 0.0 }
  0x9d   :  { %727 = vperm.xlu2 %1683, %v585_v32   ;;  %v1133_v32 = vld [vmem:[%s2556_s5 + $0x68] sm:$0xff] }
  0x9e   :  { %722 = vperm.xlu1 %1682, %v584_v33   ;;  %717 = vperm.xlu0 %1681, %v583_v34   ;;  %v1132_v34 = vld [vmem:[%s2556_s5 + $0x60] sm:$0xff] }
  0xa0   :  { %v2023_v45 = vpop.permute.xlu1 %178  ;;  %v2027_v47 = vpop.permute.xlu0 %173 }
  0xa1   :  { %v405_v37 = vpop.f32.mrf.mxu0 }
  0xa2   :  { %v406_v38 = vadd.f32 %v405_v37, %v114_v3  ;;  %v2065_v3 = vpop.permute.xlu2 %198  ;;  %v1131_v37 = vld [vmem:[%s2556_s5 + $0x58] sm:$0xff] }
  0xa4   :  { %v481_v44 = vmax.f32 %v406_v38, 0.0 }
  0xa5   :  { %742 = vperm.xlu2 %1683, %v588_v39  }
  0xa6   :  { %737 = vperm.xlu1 %1682, %v587_v41   ;;  %732 = vperm.xlu0 %1681, %v586_v42   ;;  %v2025_v46 = vpack.c.bf16 %v481_v44, %v480_v43 }
  0xa8   :  { %v2046_v55 = vpop.permute.xlu1 %193  ;;  %v2049_v57 = vpop.permute.xlu0 %188 }
  0xa9   :  { %v408_v49 = vpop.f32.mrf.mxu0 }
  0xaa   :  { %v409_v56 = vadd.f32 %v408_v49, %v1939_v0  ;;  %v2061_v0 = vpop.f32.mrf.mxu3 }
  0xac   :  { %1480 = vmatmul.msk.bf16.gmra.mxu0 %vm336_vm1, %v1624_v48  ;;  %v482_v63 = vmax.f32 %v409_v56, 0.0  ;;  %v1136_v48 = vld [vmem:[%s2556_s5 + $0x80] sm:$0xff] }
  0xad   :  { %1159 = vperm.xlu2 %1683, %v1121_v50   ;;  %v1135_v50 = vld [vmem:[%s2556_s5 + $0x78] sm:$0xff] }
  0xae   :  { %1154 = vperm.xlu1 %1682, %v1120_v51   ;;  %747 = vperm.xlu0 %1681, %v589_v52   ;;  %v1134_v51 = vld [vmem:[%s2556_s5 + $0x70] sm:$0xff] }
  0xb0   :  { %v2070_v6 = vpop.permute.xlu1 %208  ;;  %v2076_v9 = vpop.permute.xlu0 %203 }
  0xb1   :  { %v410_v58 = vpop.f32.mrf.mxu0 }
  0xb2   :  { %v411_v59 = vadd.f32 %v410_v58, %v1957_v8  ;;  %v1127_v8 = vld [vmem:[%s2556_s5 + $0x38] sm:$0xff]  ;;  %v468_v14 = vpop.f32.mrf.mxu3 }
  0xb4   :  { %v483_v1 = vmax.f32 %v411_v59, 0.0 }
  0xb5   :  { %1174 = vperm.xlu2 %1683, %v1124_v60  }
  0xb6   :  { %1169 = vperm.xlu1 %1682, %v1123_v61   ;;  %1164 = vperm.xlu0 %1681, %v1122_v62   ;;  %v2063_v2 = vpack.c.bf16 %v483_v1, %v482_v63 }
  0xb8   :  { %v2097_v23 = vpop.permute.xlu1 %223  ;;  %v2099_v28 = vpop.permute.xlu0 %218 }
  0xb9   :  { %v413_v5 = vpop.f32.mrf.mxu0 }
  0xba   :  { %v414_v7 = vadd.f32 %v413_v5, %v1964_v11  ;;  %v2085_v11 = vpop.permute.xlu2 %213  ;;  %v470_v26 = vpop.f32.mrf.mxu3 }
  0xbc   :  { %1481 = vmatmul.msk.bf16.gmra.mxu0 %vm336_vm1, %v1625_v4  ;;  %v484_v24 = vmax.f32 %v414_v7, 0.0 }
  0xbd   :  { %1189 = vperm.xlu2 %1683, %v1127_v8  }
  0xbe   :  { %1184 = vperm.xlu1 %1682, %v1126_v12   ;;  %1179 = vperm.xlu0 %1681, %v1125_v13   ;;  %v1139_v13 = vld [vmem:[%s2556_s5 + $0x98] sm:$0xff] }
  0xc0   :  { %v239_v39 = vpop.permute.xlu1 %238  ;;  %v254_v41 = vpop.permute.xlu0 %253 }
  0xc1   :  { %v415_v15 = vpop.f32.mrf.mxu0  ;;  %v469_v59 = vadd.f32 %v468_v14, %v239_v39  ;;  %v1147_v39 = vld [vmem:[%s2556_s5 + $0xd8] sm:$0xff] }
  0xc2   :  { %v416_v16 = vadd.f32 %v415_v15, %v1962_v10  ;;  %v249_v33 = vpop.permute.xlu2 %248  ;;  %v473_v38 = vpop.f32.mrf.mxu3 }
  0xc3   :  { %v474_v49 = vadd.f32 %v473_v38, %v249_v33  ;;  %v506_v7 = vmax.f32 %v469_v59, 0.0  ;;  %v1144_v33 = vld [vmem:[%s2556_s5 + $0xc0] sm:$0xff] }
  0xc4   :  { %v485_v25 = vmax.f32 %v416_v16, 0.0  ;;  %v1138_v16 = vld [vmem:[%s2556_s5 + $0x90] sm:$0xff]  ;;  %v1148_v38 = vld [vmem:[%s2556_s5 + $0xe0] sm:$0xff] }
  0xc5   :  { %1204 = vperm.xlu2 %1683, %v1130_v18   ;;  %v508_v61 = vmax.f32 %v474_v49, 0.0  ;;  %v1137_v18 = vld [vmem:[%s2556_s5 + $0x88] sm:$0xff] }
  0xc6   :  { %1199 = vperm.xlu1 %1682, %v1129_v20   ;;  %1194 = vperm.xlu0 %1681, %v1128_v21   ;;  %v2101_v10 = vpack.c.bf16 %v485_v25, %v484_v24  ;;  %v1142_v24 = vld [vmem:[%s2556_s5 + $0xb0] sm:$0xff] }
  0xc8   :  { %v234_v1 = vpop.permute.xlu1 %233  ;;  %v229_v4 = vpop.permute.xlu0 %228 }
  0xc9   :  { %v418_v31 = vpop.f32.mrf.mxu0  ;;  %v464_v8 = vadd.f32 %v2042_v53, %v229_v4  ;;  %v466_v12 = vadd.f32 %v2061_v0, %v234_v1 }
  0xca   :  { %v419_v42 = vadd.f32 %v418_v31, %v1976_v17  ;;  %v475_v58 = vpop.f32.mrf.mxu3  ;;  %v244_v17 = vpop.permute.xlu2 %243 }
  0xcb   :  { %v471_v60 = vadd.f32 %v470_v26, %v244_v17  ;;  %v504_v53 = vmax.f32 %v464_v8, 0.0  ;;  %v505_v0 = vmax.f32 %v466_v12, 0.0  ;;  %v1141_v26 = vld [vmem:[%s2556_s5 + $0xa8] sm:$0xff] }
  0xcc   :  { %1482 = vmatmul.msk.bf16.gmra.mxu0 %vm336_vm1, %v1626_v30  ;;  %v486_v52 = vmax.f32 %v419_v42, 0.0  ;;  %v1140_v30 = vld [vmem:[%s2556_s5 + $0xa0] sm:$0xff] }
  0xcd   :  { %1219 = vperm.xlu2 %1683, %v1133_v32   ;;  %v507_v14 = vmax.f32 %v471_v60, 0.0  ;;  %v2149_v25 = vpack.c.bf16 %v505_v0, %v504_v53  ;;  %v1145_v32 = vld [vmem:[%s2556_s5 + $0xc8] sm:$0xff]  ;;  %v1633_v53 = vld [vmem:[%s2554_s3 + $0x14] sm:$0xf0] }
  0xce   :  { %1214 = vperm.xlu1 %1682, %v1132_v34   ;;  %1209 = vperm.xlu0 %1681, %v1131_v37   ;;  %v1143_v34 = vld [vmem:[%s2556_s5 + $0xb8] sm:$0xff] }
  0xcf   :  { %v2143_v20 = vpack.c.bf16 %v507_v14, %v506_v7 }
  0xd1   :  { %v420_v43 = vpop.f32.mrf.mxu0 }
  0xd2   :  { %v421_v44 = vadd.f32 %v420_v43, %v1983_v22  ;;  %v476_v22 = vadd.f32 %v475_v58, %v254_v41  ;;  %v1146_v41 = vld [vmem:[%s2556_s5 + $0xd0] sm:$0xff]  ;;  %v1151_v43 = vld [vmem:[%s2556_s5 + $0xf8] sm:$0xff] }
  0xd4   :  { %v487_v56 = vmax.f32 %v421_v44, 0.0  ;;  %v509_v63 = vmax.f32 %v476_v22, 0.0  ;;  %v1150_v44 = vld [vmem:[%s2556_s5 + $0xf0] sm:$0xff] }
  0xd5   :  { %1234 = vperm.xlu2 %1683, %v1136_v48   ;;  %v1149_v48 = vld [vmem:[%s2556_s5 + $0xe8] sm:$0xff] }
  0xd6   :  { %1229 = vperm.xlu1 %1682, %v1135_v50   ;;  %1224 = vperm.xlu0 %1681, %v1134_v51   ;;  %v2127_v62 = vpack.c.bf16 %v487_v56, %v486_v52  ;;  %v2134_v15 = vpack.c.bf16 %v509_v63, %v508_v61  ;;  %v1381_v56 = vld [vmem:[#allocation2] sm:$0x1] }
  0xd8   :  { %999 = vmatpush.bf16.msra.mxu2 %v2134_v15 }
  0xd9   :  { %v423_v5 = vpop.f32.mrf.mxu0 }
  0xda   :  { %v424_v63 = vadd.f32 %v423_v5, %v1978_v19 }
  0xdc   :  { %1000 = vmatpush.bf16.msra.mxu2 %v2143_v20  ;;  %v488_v7 = vmax.f32 %v424_v63, 0.0 }
  0xdd   :  { %1249 = vperm.xlu2 %1683, %v1139_v13  }
  0xde   :  { %1244 = vperm.xlu1 %1682, %v1138_v16   ;;  %1239 = vperm.xlu0 %1681, %v1137_v18   ;;  %v1496_v18 = vld [vmem:[%s2554_s3 + $0x10] sm:$0xf] }
  0xe0   :  { %1001 = vmatpush.bf16.msra.mxu2 %v2149_v25 }
  0xe1   :  { %v425_v21 = vpop.f32.mrf.mxu0 }
  0xe2   :  { %v426_v22 = vadd.f32 %v425_v21, %v1996_v29 }
  0xe4   :  { %v489_v4 = vmax.f32 %v426_v22, 0.0 }
  0xe5   :  { %1264 = vperm.xlu2 %1683, %v1142_v24  }
  0xe6   :  { %1259 = vperm.xlu1 %1682, %v1141_v26   ;;  %1254 = vperm.xlu0 %1681, %v1140_v30   ;;  %v1635_v26 = vld [vmem:[%s2554_s3 + $0x24] sm:$0xf0]  ;;  %v1600_v30 = vld [vmem:[%s2554_s3 + $0xe0] sm:$0xf] }
  0xe9   :  { %v428_v31 = vpop.f32.mrf.mxu0 }
  0xea   :  { %v429_v58 = vadd.f32 %v428_v31, %v2010_v36  ;;  %v1659_v31 = vld [vmem:[%s2554_s3 + $0xe4] sm:$0xf0] }
  0xec   :  { %v490_v1 = vmax.f32 %v429_v58, 0.0 }
  0xed   :  { %1279 = vperm.xlu2 %1683, %v1145_v32  }
  0xee   :  { %1274 = vperm.xlu1 %1682, %v1144_v33   ;;  %1269 = vperm.xlu0 %1681, %v1143_v34   ;;  %v1601_v34 = vor.u32 %v1659_v31, %v1600_v30  ;;  %v1636_v31 = vld [vmem:[%s2554_s3 + $0x34] sm:$0xf] }
  0xf1   :  { %v430_v37 = vpop.f32.mrf.mxu0 }
  0xf2   :  { %v431_v51 = vadd.f32 %v430_v37, %v2008_v35 }
  0xf4   :  { %v491_v60 = vmax.f32 %v431_v51, 0.0 }
  0xf5   :  { %1294 = vperm.xlu2 %1683, %v1148_v38   ;;  %v1512_v38 = vld [vmem:[%s2554_s3 + $0x30] sm:$0xf] }
  0xf6   :  { %1289 = vperm.xlu1 %1682, %v1147_v39   ;;  %1284 = vperm.xlu0 %1681, %v1146_v41   ;;  %v548_v35 = vpack.c.bf16 %v491_v60, %v490_v1  ;;  %v1637_v41 = vld [vmem:[%s2554_s3 + $0x34] sm:$0xf0] }
  0xf9   :  { %v433_v42 = vpop.f32.mrf.mxu0 }
  0xfa   :  { %v434_v49 = vadd.f32 %v433_v42, %v2015_v40  ;;  %v1608_v42 = vld [vmem:[%s2554_s3 + $0xf0] sm:$0xf] }
  0xfc   :  { %v492_v17 = vmax.f32 %v434_v49, 0.0 }
  0xfd   :  { %1309 = vperm.xlu2 %1683, %v1151_v43   ;;  %v1661_v43 = vld [vmem:[%s2554_s3 + $0xf4] sm:$0xf0] }
  0xfe   :  { %1304 = vperm.xlu1 %1682, %v1150_v44   ;;  %1299 = vperm.xlu0 %1681, %v1149_v48   ;;  %v1609_v51 = vor.u32 %v1661_v43, %v1608_v42 }
 0x101   :  { %v435_v50 = vpop.f32.mrf.mxu0 }
 0x102   :  { %v436_v52 = vadd.f32 %v435_v50, %v2027_v47  ;;  %v547_v47 = vpack.c.bf16 %v489_v4, %v488_v7  ;;  %v1513_v50 = vor.u32 %v1637_v41, %v1512_v38  ;;  %v1490_v7 = vld [vmem:[%s2554_s3 + $0x8] sm:$0xf0]  ;;  %v2347_v38 = vpop.permute.xlu1 %602 }
 0x104   :  { %v493_v59 = vmax.f32 %v436_v52, 0.0 }
 0x106   :  { %1384 = vperm.xlu0 %1681, %v1381_v56   ;;  %v549_v61 = vpack.c.bf16 %v493_v59, %v492_v17 }
 0x108   :  { %910 = vmatpush.bf16.msra.mxu1 %v549_v61  ;;  %1663 = vmatpush.bf16.msrb.mxu3 %v549_v61 }
 0x109   :  { %v438_v40 = vpop.f32.mrf.mxu0 }
 0x10a   :  { %v439_v36 = vadd.f32 %v438_v40, %v2023_v45  ;;  %v1488_v45 = vld [vmem:[%s2554_s3] sm:$0xf] }
 0x10c   :  { %911 = vmatpush.bf16.msra.mxu1 %v548_v35  ;;  %1664 = vmatpush.bf16.msrb.mxu3 %v548_v35  ;;  %v494_v12 = vmax.f32 %v439_v36, 0.0  ;;  %v1586_v36 = vld [vmem:[%s2554_s3 + $0xc8] sm:$0xf0] }
 0x110   :  { %912 = vmatpush.bf16.msra.mxu1 %v547_v47  ;;  %1665 = vmatpush.bf16.msrb.mxu3 %v547_v47  ;;  %v1654_v47 = vld [vmem:[%s2554_s3 + $0xc4] sm:$0xf] }
 0x111   :  { %v440_v29 = vpop.f32.mrf.mxu0 }
 0x112   :  { %v441_v8 = vadd.f32 %v440_v29, %v2044_v54  ;;  %v1631_v54 = vld [vmem:[%s2554_s3 + $0x4] sm:$0xf0] }
 0x113   :  { %v1489_v14 = vor.u32 %v1631_v54, %v1488_v45  ;;  %v1632_v45 = vld [vmem:[%s2554_s3 + $0x14] sm:$0xf]  ;;  %v1498_v54 = vld [vmem:[%s2554_s3 + $0x18] sm:$0xf0] }
 0x114   :  { %v495_v13 = vmax.f32 %v441_v8, 0.0  ;;  %913 = vmatpush.bf16.msra.mxu1 %v2127_v62  ;;  %1666 = vmatpush.bf16.msrb.mxu3 %v2127_v62  ;;  %v1589_v8 = vor.u32 %v1654_v47, %v1586_v36  ;;  %v1538_v47 = vld [vmem:[%s2554_s3 + $0x68] sm:$0xf0] }
 0x116   :  { %v2195_v19 = vpack.c.bf16 %v495_v13, %v494_v12  ;;  %v1528_v12 = vld [vmem:[%s2554_s3 + $0x50] sm:$0xf]  ;;  %v1641_v13 = vld [vmem:[%s2554_s3 + $0x54] sm:$0xf0] }
 0x118   :  { %914 = vmatpush.bf16.msra.mxu1 %v2101_v10  ;;  %1667 = vmatpush.bf16.msrb.mxu3 %v2101_v10  ;;  %v1584_v10 = vld [vmem:[%s2554_s3 + $0xc0] sm:$0xf] }
 0x119   :  { %v2199_v5 = vpop.f32.mrf.mxu0 }
 0x11c   :  { %915 = vmatpush.bf16.msra.mxu1 %v2063_v2  ;;  %1668 = vmatpush.bf16.msrb.mxu3 %v2063_v2  ;;  %v1655_v2 = vld [vmem:[%s2554_s3 + $0xc4] sm:$0xf0] }
 0x11d   :  { %v1585_v16 = vor.u32 %v1655_v2, %v1584_v10  ;;  %v1594_v10 = vld [vmem:[%s2554_s3 + $0xd8] sm:$0xf0]  ;;  %v1501_v2 = vor.u32 %v1632_v45, %v1498_v54  ;;  %v1576_v54 = vld [vmem:[%s2554_s3 + $0xb0] sm:$0xf] }
 0x120   :  { %916 = vmatpush.bf16.msra.mxu1 %v2025_v46  ;;  %1669 = vmatpush.bf16.msrb.mxu3 %v2025_v46 }
 0x121   :  { %v445_v62 = vpop.f32.mrf.mxu0 }
 0x124   :  { %917 = vmatpush.bf16.msra.mxu1 %v1991_v27  ;;  %1670 = vmatpush.bf16.msrb.mxu3 %v1991_v27  ;;  %v1592_v27 = vld [vmem:[%s2554_s3 + $0xd0] sm:$0xf] }
 0x127   :  { %918 = vmatmul.bf16.vlgmr.msra.gmra.mxu1 %v1489_v14  ;;  %978 = vmatmul.bf16.vlgmr.msrb.gmra.mxu3 %v1585_v16  ;;  %v1536_v14 = vld [vmem:[%s2554_s3 + $0x60] sm:$0xf]  ;;  %v1643_v16 = vld [vmem:[%s2554_s3 + $0x64] sm:$0xf0] }
 0x128   :  { %1671 = vmatpush.bf16.msra.mxu3 %v2134_v15  ;;  %v1657_v15 = vld [vmem:[%s2554_s3 + $0xd4] sm:$0xf0] }
 0x129   :  { %v448_v46 = vpop.f32.mrf.mxu0  ;;  %v1593_v21 = vor.u32 %v1657_v15, %v1592_v27  ;;  %v1658_v27 = vld [vmem:[%s2554_s3 + $0xe4] sm:$0xf]  ;;  %v1602_v15 = vld [vmem:[%s2554_s3 + $0xe8] sm:$0xf0] }
 0x12a   :  { %v449_v22 = vadd.f32 %v448_v46, %v2065_v3  ;;  %v1520_v3 = vld [vmem:[%s2554_s3 + $0x40] sm:$0xf]  ;;  %v1537_v46 = vor.u32 %v1643_v16, %v1536_v14  ;;  %v1644_v14 = vld [vmem:[%s2554_s3 + $0x74] sm:$0xf]  ;;  %v1546_v16 = vld [vmem:[%s2554_s3 + $0x78] sm:$0xf0] }
 0x12c   :  { %1672 = vmatpush.bf16.msra.mxu3 %v2143_v20  ;;  %v1497_v20 = vor.u32 %v1633_v53, %v1496_v18  ;;  %v498_v63 = vmax.f32 %v449_v22, 0.0  ;;  %v1634_v18 = vld [vmem:[%s2554_s3 + $0x24] sm:$0xf]  ;;  %v1506_v53 = vld [vmem:[%s2554_s3 + $0x28] sm:$0xf0] }
 0x12d   :  { %v1649_v22 = vld [vmem:[%s2554_s3 + $0x94] sm:$0xf0] }
 0x130   :  { %1673 = vmatpush.bf16.msra.mxu3 %v2149_v25  ;;  %v1504_v25 = vld [vmem:[%s2554_s3 + $0x20] sm:$0xf] }
 0x131   :  { %v450_v0 = vpop.f32.mrf.mxu0  ;;  %v1505_v33 = vor.u32 %v1635_v26, %v1504_v25  ;;  %v1645_v25 = vld [vmem:[%s2554_s3 + $0x74] sm:$0xf0]  ;;  %v2331_v26 = vpop.permute.xlu0 %597 }
 0x132   :  { %v451_v58 = vadd.f32 %v450_v0, %v2076_v9  ;;  %v1509_v0 = vor.u32 %v1634_v18, %v1506_v53 }
 0x137   :  { %923 = vmatmul.bf16.gmra.mxu1 %v1497_v20  ;;  %983 = vmatmul.bf16.gmra.mxu3 %v1593_v21  ;;  %v1605_v20 = vor.u32 %v1658_v27, %v1602_v15  ;;  %v2323_v21 = vpop.permute.xlu2 %592 }
 0x139   :  { %v453_v24 = vpop.f32.mrf.mxu0  ;;  %v2349_v42 = vpop.permute.xlu0 %612 }
 0x141   :  { %v455_v32 = vpop.f32.mrf.mxu0 }
 0x142   :  { %v456_v48 = vadd.f32 %v455_v32, %v2085_v11  ;;  %v446_v11 = vadd.f32 %v445_v62, %v2046_v55  ;;  %v1639_v55 = vld [vmem:[%s2554_s3 + $0x44] sm:$0xf0]  ;;  %v1514_v32 = vld [vmem:[%s2554_s3 + $0x38] sm:$0xf0] }
 0x143   :  { %v1521_v35 = vor.u32 %v1639_v55, %v1520_v3 }
 0x144   :  { %v501_v17 = vmax.f32 %v456_v48, 0.0  ;;  %v497_v9 = vmax.f32 %v446_v11, 0.0  ;;  %v1552_v48 = vld [vmem:[%s2554_s3 + $0x80] sm:$0xf] }
 0x147   :  { %928 = vmatmul.bf16.gmra.mxu1 %v1505_v33  ;;  %988 = vmatmul.bf16.gmra.mxu3 %v1601_v34  ;;  %v1660_v33 = vld [vmem:[%s2554_s3 + $0xf4] sm:$0xf]  ;;  %v1610_v34 = vld [vmem:[%s2554_s3 + $0xf8] sm:$0xf0] }
 0x148   :  { %v1613_v41 = vor.u32 %v1660_v33, %v1610_v34 }
 0x149   :  { %v458_v37 = vpop.f32.mrf.mxu0 }
 0x14a   :  { %v459_v39 = vadd.f32 %v458_v37, %v2099_v28  ;;  %v454_v28 = vadd.f32 %v453_v24, %v2070_v6  ;;  %v444_v6 = vadd.f32 %v2199_v5, %v2049_v57  ;;  %v1630_v57 = vld [vmem:[%s2554_s3 + $0x4] sm:$0xf]  ;;  %v1529_v5 = vor.u32 %v1641_v13, %v1528_v12  ;;  %v1544_v24 = vld [vmem:[%s2554_s3 + $0x70] sm:$0xf]  ;;  %v2345_v37 = vpop.permute.xlu2 %607 }
 0x14b   :  { %v1493_v29 = vor.u32 %v1630_v57, %v1490_v7  ;;  %v1545_v30 = vor.u32 %v1645_v25, %v1544_v24  ;;  %v1642_v7 = vld [vmem:[%s2554_s3 + $0x64] sm:$0xf]  ;;  %v1554_v25 = vld [vmem:[%s2554_s3 + $0x88] sm:$0xf0] }
 0x14c   :  { %v502_v52 = vmax.f32 %v459_v39, 0.0  ;;  %v500_v60 = vmax.f32 %v454_v28, 0.0  ;;  %v496_v40 = vmax.f32 %v444_v6, 0.0  ;;  %v1517_v39 = vor.u32 %v1636_v31, %v1514_v32  ;;  %v1522_v28 = vld [vmem:[%s2554_s3 + $0x48] sm:$0xf0] }
 0x14d   :  { %v1640_v6 = vld [vmem:[%s2554_s3 + $0x54] sm:$0xf]  ;;  %v1646_v24 = vld [vmem:[%s2554_s3 + $0x84] sm:$0xf] }
 0x14e   :  { %v553_v61 = vpack.c.bf16 %v501_v17, %v500_v60  ;;  %v551_v4 = vpack.c.bf16 %v497_v9, %v496_v40  ;;  %v1557_v32 = vor.u32 %v1646_v24, %v1554_v25 }
 0x151   :  { %v460_v44 = vpop.f32.mrf.mxu0 }
 0x152   :  { %v461_v49 = vadd.f32 %v460_v44, %v2097_v23  ;;  %v499_v23 = vmax.f32 %v451_v58, 0.0  ;;  %v2351_v43 = vpop.permute.xlu2 %622  ;;  %v2353_v44 = vpop.permute.xlu1 %617 }
 0x154   :  { %v503_v56 = vmax.f32 %v461_v49, 0.0  ;;  %v552_v1 = vpack.c.bf16 %v499_v23, %v498_v63  ;;  %v1647_v49 = vld [vmem:[%s2554_s3 + $0x84] sm:$0xf0]  ;;  %v1530_v63 = vld [vmem:[%s2554_s3 + $0x58] sm:$0xf0] }
 0x155   :  { %v1533_v9 = vor.u32 %v1640_v6, %v1530_v63 }
 0x156   :  { %v554_v59 = vpack.c.bf16 %v503_v56, %v502_v52  ;;  %v2367_v52 = vpop.permute.xlu0 %627 }
 0x157   :  { %933 = vmatmul.bf16.gmra.mxu1 %v1513_v50  ;;  %993 = vmatmul.bf16.gmra.mxu3 %v1609_v51  ;;  %v1553_v50 = vor.u32 %v1647_v49, %v1552_v48  ;;  %v1638_v51 = vld [vmem:[%s2554_s3 + $0x44] sm:$0xf] }
 0x158   :  { %1002 = vmatpush.bf16.msra.mxu2 %v554_v59  ;;  %1674 = vmatpush.bf16.msra.mxu3 %v554_v59  ;;  %v1525_v56 = vor.u32 %v1638_v51, %v1522_v28  ;;  %v1560_v59 = vld [vmem:[%s2554_s3 + $0x90] sm:$0xf]  ;;  %v1648_v51 = vld [vmem:[%s2554_s3 + $0x94] sm:$0xf]  ;;  %v1562_v28 = vld [vmem:[%s2554_s3 + $0x98] sm:$0xf0] }
 0x159   :  { %v1561_v11 = vor.u32 %v1649_v22, %v1560_v59 }
 0x15a   :  { %v2369_v58 = vpop.permute.xlu2 %637  ;;  %v2371_v17 = vpop.permute.xlu1 %632 }
 0x15c   :  { %1003 = vmatpush.bf16.msra.mxu2 %v553_v61  ;;  %1675 = vmatpush.bf16.msra.mxu3 %v553_v61 }
 0x15e   :  { %v2379_v60 = vpop.permute.xlu0 %642 }
 0x160   :  { %1004 = vmatpush.bf16.msra.mxu2 %v552_v1  ;;  %1676 = vmatpush.bf16.msra.mxu3 %v552_v1 }
 0x162   :  { %v2381_v23 = vpop.permute.xlu2 %652  ;;  %v2383_v61 = vpop.permute.xlu1 %647 }
 0x164   :  { %1005 = vmatpush.bf16.msra.mxu2 %v551_v4  ;;  %1677 = vmatpush.bf16.msra.mxu3 %v551_v4  ;;  %v1568_v4 = vld [vmem:[%s2554_s3 + $0xa0] sm:$0xf] }
 0x166   :  { %v2391_v1 = vpop.permute.xlu0 %657 }
 0x167   :  { %938 = vmatmul.bf16.gmra.mxu1 %v1521_v35  ;;  %v1651_v35 = vld [vmem:[%s2554_s3 + $0xa4] sm:$0xf0] }
 0x168   :  { %1006 = vmatpush.bf16.msra.mxu2 %v2195_v19  ;;  %1678 = vmatpush.bf16.msra.mxu3 %v2195_v19  ;;  %v1656_v19 = vld [vmem:[%s2554_s3 + $0xd4] sm:$0xf]  ;;  %v1569_v57 = vor.u32 %v1651_v35, %v1568_v4 }
 0x169   :  { %v1597_v62 = vor.u32 %v1656_v19, %v1594_v10  ;;  %v1653_v19 = vld [vmem:[%s2554_s3 + $0xb4] sm:$0xf0] }
 0x16a   :  { %v2393_v3 = vpop.permute.xlu2 %667  ;;  %v2395_v55 = vpop.permute.xlu1 %662 }
 0x16b   :  { %1007 = vmatmul.bf16.vlgmr.msra.gmra.mxu2 %v1493_v29  ;;  %1067 = vmatmul.bf16.vlgmr.msra.gmra.mxu3 %v1589_v8  ;;  %v1541_v8 = vor.u32 %v1642_v7, %v1538_v47 }
 0x16e   :  { %v2409_v36 = vpop.permute.xlu0 %672 }
 0x172   :  { %v2411_v12 = vpop.permute.xlu2 %682  ;;  %v2413_v13 = vpop.permute.xlu1 %677 }
 0x177   :  { %943 = vmatmul.bf16.gmra.mxu1 %v1529_v5  ;;  %v2415_v5 = vpop.permute.xlu0 %687 }
 0x17a   :  { %v2423_v10 = vpop.permute.xlu2 %697 }
 0x17b   :  { %1012 = vmatmul.bf16.gmra.mxu2 %v1501_v2  ;;  %1072 = vmatmul.bf16.gmra.mxu3 %v1597_v62  ;;  %v2425_v2 = vpop.permute.xlu1 %692  ;;  %v1577_v62 = vor.u32 %v1653_v19, %v1576_v54 }
 0x17f   :  { %v2433_v18 = vpop.permute.xlu0 %702 }
 0x182   :  { %v2435_v27 = vpop.permute.xlu2 %712 }
 0x183   :  { %v2437_v15 = vpop.permute.xlu1 %707 }
 0x187   :  { %948 = vmatmul.bf16.gmra.mxu1 %v1537_v46  ;;  %v1549_v46 = vor.u32 %v1644_v14, %v1546_v16  ;;  %v1650_v14 = vld [vmem:[%s2554_s3 + $0xa4] sm:$0xf]  ;;  %v1570_v16 = vld [vmem:[%s2554_s3 + $0xa8] sm:$0xf0] }
 0x18b   :  { %1017 = vmatmul.bf16.gmra.mxu2 %v1509_v0  ;;  %1077 = vmatmul.bf16.gmra.mxu3 %v1605_v20  ;;  %v2439_v0 = vpop.permute.xlu0 %717  ;;  %v2449_v31 = vpop.permute.xlu1 %722 }
 0x193   :  { %v2451_v33 = vpop.permute.xlu0 %732 }
 0x197   :  { %953 = vmatmul.bf16.gmra.mxu1 %v1545_v30  ;;  %v2447_v30 = vpop.permute.xlu2 %727 }
 0x19b   :  { %1022 = vmatmul.bf16.gmra.mxu2 %v1517_v39  ;;  %1082 = vmatmul.bf16.gmra.mxu3 %v1613_v41  ;;  %v2465_v6 = vpop.permute.xlu0 %747 }
 0x19c   :  { %2559 = vst [vmem:[#allocation6_spill] sm:$0xff] %v2465_v6 }
 0x19f   :  { %v2454_v49 = vpop.permute.xlu2 %742 }
 0x1a4   :  { %v919_v40 = vpop.f32.mrf.mxu1 }
 0x1a5   :  { %v920_v34 = vadd.f32 %v919_v40, %v2323_v21 }
 0x1a7   :  { %958 = vmatmul.bf16.gmra.mxu1 %v1553_v50  ;;  %v2456_v50 = vpop.permute.xlu1 %737  ;;  %v1160_v40 = vpop.permute.xlu2 %1159 }
 0x1ab   :  { %1027 = vmatmul.bf16.gmra.mxu2 %v1525_v56 }
 0x1ac   :  { %v921_v29 = vpop.f32.mrf.mxu1 }
 0x1ad   :  { %v922_v56 = vadd.f32 %v921_v29, %v2331_v26  ;;  %v1165_v26 = vpop.permute.xlu0 %1164 }
 0x1af   :  { %v1155_v4 = vpop.permute.xlu1 %1154 }
 0x1b4   :  { %v924_v45 = vpop.f32.mrf.mxu1 }
 0x1b5   :  { %v925_v7 = vadd.f32 %v924_v45, %v2347_v38  ;;  %v1573_v45 = vor.u32 %v1650_v14, %v1570_v16 }
 0x1b7   :  { %963 = vmatmul.bf16.gmra.mxu1 %v1561_v11  ;;  %v1565_v11 = vor.u32 %v1648_v51, %v1562_v28 }
 0x1bb   :  { %1032 = vmatmul.bf16.gmra.mxu2 %v1533_v9 }
 0x1bc   :  { %v926_v53 = vpop.f32.mrf.mxu1 }
 0x1c4   :  { %v929_v20 = vpop.f32.mrf.mxu1 }
 0x1c5   :  { %v930_v51 = vadd.f32 %v929_v20, %v2349_v42 }
 0x1c7   :  { %968 = vmatmul.bf16.gmra.mxu1 %v1569_v57 }
 0x1cb   :  { %1037 = vmatmul.bf16.gmra.mxu2 %v1541_v8 }
 0x1cc   :  { %v931_v39 = vpop.f32.mrf.mxu1 }
 0x1d4   :  { %v934_v63 = vpop.f32.mrf.mxu1 }
 0x1d7   :  { %973 = vmatmul.bf16.gmra.mxu1 %v1577_v62 }
 0x1db   :  { %1042 = vmatmul.bf16.gmra.mxu2 %v1549_v46  ;;  %v927_v46 = vadd.f32 %v926_v53, %v2345_v37  ;;  %v1652_v37 = vld [vmem:[%s2554_s3 + $0xb4] sm:$0xf]  ;;  %v1578_v53 = vld [vmem:[%s2554_s3 + $0xb8] sm:$0xf0]  ;;  %s1711_s3 = smov [#allocation3]  }
 0x1dc   :  { %v936_v29 = vpop.f32.mrf.mxu1  ;;  %v1581_v20 = vor.u32 %v1652_v37, %v1578_v53  ;;  %s1395_s27 = sshll.u32 %s1711_s3, 4  ;;  %s1396_s27 = int_to_ptr.vmem [resolvable:$true] %s1395_s27 }
 0x1eb   :  { %1047 = vmatmul.bf16.gmra.mxu2 %v1557_v32 }
 0x1ee   :  { %v1008_v41 = vpop.f32.mrf.mxu2 }
 0x1ef   :  { %v1009_v48 = vadd.f32 %v1008_v41, %v920_v34  ;;  %v1170_v34 = vpop.permute.xlu1 %1169 }
 0x1f1   :  { %v1088_v22 = vmax.f32 %v1009_v48, 0.0  ;;  %v939_v48 = vpop.f32.mrf.mxu1 }
 0x1f3   :  { %v1312_v35 = vmul.f32 %v1155_v4, %v1088_v22 }
 0x1f6   :  { %v1010_v59 = vpop.f32.mrf.mxu2 }
 0x1f7   :  { %v1011_v21 = vadd.f32 %v1010_v59, %v922_v56 }
 0x1f9   :  { %v1089_v9 = vmax.f32 %v1011_v21, 0.0  ;;  %v1175_v21 = vpop.permute.xlu2 %1174  ;;  %v941_v4 = vpop.f32.mrf.mxu1 }
 0x1fb   :  { %v1313_v57 = vmul.f32 %v1160_v40, %v1089_v9  ;;  %1052 = vmatmul.bf16.gmra.mxu2 %v1565_v11  ;;  %v932_v9 = vadd.f32 %v931_v39, %v2353_v44  ;;  %v937_v39 = vadd.f32 %v936_v29, %v2367_v52  ;;  %v942_v29 = vadd.f32 %v941_v4, %v2369_v58 }
 0x1fd   :  { %v1344_v47 = vadd.f32 %v1313_v57, %v1312_v35 }
 0x1fe   :  { %v1013_v8 = vpop.f32.mrf.mxu2 }
 0x1ff   :  { %v1014_v54 = vadd.f32 %v1013_v8, %v925_v7  ;;  %v1180_v7 = vpop.permute.xlu0 %1179  ;;  %v2483_v8 = vpop.f32.mrf.mxu3 }
 0x201   :  { %v1090_v19 = vmax.f32 %v1014_v54, 0.0  ;;  %v935_v54 = vadd.f32 %v934_v63, %v2351_v43  ;;  %v944_v14 = vpop.f32.mrf.mxu1  ;;  %v940_v43 = vadd.f32 %v939_v48, %v2371_v17 }
 0x202   :  { %v945_v17 = vadd.f32 %v944_v14, %v2379_v60 }
 0x203   :  { %v1314_v62 = vmul.f32 %v1165_v26, %v1090_v19 }
 0x205   :  { %v1345_v24 = vadd.f32 %v1344_v47, %v1314_v62 }
 0x206   :  { %v1015_v25 = vpop.f32.mrf.mxu2 }
 0x207   :  { %v1016_v38 = vadd.f32 %v1015_v25, %v927_v46  ;;  %v1185_v46 = vpop.permute.xlu1 %1184  ;;  %v2487_v25 = vpop.f32.mrf.mxu3 }
 0x209   :  { %v1091_v32 = vmax.f32 %v1016_v38, 0.0 }
 0x20b   :  { %v1315_v41 = vmul.f32 %v1170_v34, %v1091_v32  ;;  %1057 = vmatmul.bf16.gmra.mxu2 %v1573_v45  ;;  %v1190_v34 = vpop.permute.xlu2 %1189 }
 0x20d   :  { %v1346_v28 = vadd.f32 %v1345_v24, %v1315_v41  ;;  %v946_v41 = vpop.f32.mrf.mxu1 }
 0x20e   :  { %v1018_v56 = vpop.f32.mrf.mxu2  ;;  %v947_v58 = vadd.f32 %v946_v41, %v2383_v61 }
 0x20f   :  { %v1019_v59 = vadd.f32 %v1018_v56, %v930_v51 }
 0x211   :  { %v1092_v22 = vmax.f32 %v1019_v59, 0.0  ;;  %v2490_v59 = vpop.f32.mrf.mxu3 }
 0x213   :  { %v1316_v11 = vmul.f32 %v1175_v21, %v1092_v22  ;;  %v1195_v21 = vpop.permute.xlu0 %1194 }
 0x215   :  { %v1347_v40 = vadd.f32 %v1346_v28, %v1316_v11  ;;  %v949_v52 = vpop.f32.mrf.mxu1 }
 0x216   :  { %v1020_v35 = vpop.f32.mrf.mxu2  ;;  %v950_v60 = vadd.f32 %v949_v52, %v2381_v23 }
 0x217   :  { %v1021_v42 = vadd.f32 %v1020_v35, %v932_v9  ;;  %v1200_v35 = vpop.permute.xlu1 %1199 }
 0x219   :  { %v1093_v57 = vmax.f32 %v1021_v42, 0.0  ;;  %v2493_v42 = vpop.f32.mrf.mxu3 }
 0x21b   :  { %v1317_v47 = vmul.f32 %v1180_v7, %v1093_v57  ;;  %1062 = vmatmul.bf16.gmra.mxu2 %v1581_v20 }
 0x21d   :  { %v1348_v19 = vadd.f32 %v1347_v40, %v1317_v47  ;;  %v951_v57 = vpop.f32.mrf.mxu1 }
 0x21e   :  { %v1023_v26 = vpop.f32.mrf.mxu2 }
 0x21f   :  { %v1024_v62 = vadd.f32 %v1023_v26, %v935_v54 }
 0x221   :  { %v1094_v16 = vmax.f32 %v1024_v62, 0.0  ;;  %v2496_v62 = vpop.f32.mrf.mxu3 }
 0x223   :  { %v1318_v44 = vmul.f32 %v1185_v46, %v1094_v16 }
 0x225   :  { %v1349_v24 = vadd.f32 %v1348_v19, %v1318_v44  ;;  %v1205_v19 = vpop.permute.xlu2 %1204  ;;  %v954_v44 = vpop.f32.mrf.mxu1 }
 0x226   :  { %v1025_v38 = vpop.f32.mrf.mxu2 }
 0x227   :  { %v1026_v45 = vadd.f32 %v1025_v38, %v937_v39 }
 0x229   :  { %v1095_v32 = vmax.f32 %v1026_v45, 0.0  ;;  %v2500_v45 = vpop.f32.mrf.mxu3 }
 0x22b   :  { %v1319_v51 = vmul.f32 %v1190_v34, %v1095_v32 }
 0x22d   :  { %v1350_v63 = vadd.f32 %v1349_v24, %v1319_v51  ;;  %v1210_v24 = vpop.permute.xlu0 %1209 }
 0x22e   :  { %v1028_v28 = vpop.f32.mrf.mxu2 }
 0x22f   :  { %v1029_v56 = vadd.f32 %v1028_v28, %v940_v43  ;;  %v1215_v43 = vpop.permute.xlu1 %1214 }
 0x231   :  { %v1096_v22 = vmax.f32 %v1029_v56, 0.0  ;;  %v2502_v41 = vpop.f32.mrf.mxu3 }
 0x232   :  { %2560 = vst [vmem:[#allocation7_spill] sm:$0xff] %v2502_v41 }
 0x233   :  { %v1320_v11 = vmul.f32 %v1195_v21, %v1096_v22 }
 0x235   :  { %v1351_v37 = vadd.f32 %v1350_v63, %v1320_v11  ;;  %v956_v63 = vpop.f32.mrf.mxu1 }
 0x236   :  { %v1030_v53 = vpop.f32.mrf.mxu2 }
 0x237   :  { %v1031_v9 = vadd.f32 %v1030_v53, %v942_v29 }
 0x239   :  { %v1097_v40 = vmax.f32 %v1031_v9, 0.0  ;;  %v2504_v11 = vpop.f32.mrf.mxu3 }
 0x23a   :  { %2561 = vst [vmem:[#allocation8_spill] sm:$0xff] %v2504_v11 }
 0x23b   :  { %v1321_v20 = vmul.f32 %v1200_v35, %v1097_v40 }
 0x23d   :  { %v1352_v48 = vadd.f32 %v1351_v37, %v1321_v20  ;;  %v959_v22 = vpop.f32.mrf.mxu1  ;;  %v1220_v20 = vpop.permute.xlu2 %1219 }
 0x23e   :  { %v1033_v7 = vpop.f32.mrf.mxu2 }
 0x23f   :  { %v1034_v47 = vadd.f32 %v1033_v7, %v945_v17  ;;  %v1225_v7 = vpop.permute.xlu0 %1224 }
 0x241   :  { %v1098_v54 = vmax.f32 %v1034_v47, 0.0  ;;  %v2506_v23 = vpop.f32.mrf.mxu3 }
 0x243   :  { %v1322_v26 = vmul.f32 %v1205_v19, %v1098_v54  ;;  %v1230_v54 = vpop.permute.xlu1 %1229 }
 0x245   :  { %v1353_v4 = vadd.f32 %v1352_v48, %v1322_v26  ;;  %v961_v29 = vpop.f32.mrf.mxu1  ;;  %v1235_v26 = vpop.permute.xlu2 %1234 }
 0x246   :  { %v1035_v16 = vpop.f32.mrf.mxu2  ;;  %v962_v6 = vadd.f32 %v961_v29, %v2413_v13 }
 0x247   :  { %v1036_v46 = vadd.f32 %v1035_v16, %v947_v58  ;;  %v1240_v16 = vpop.permute.xlu0 %1239 }
 0x249   :  { %v1099_v39 = vmax.f32 %v1036_v46, 0.0  ;;  %v2508_v9 = vpop.f32.mrf.mxu3  ;;  %v955_v46 = vadd.f32 %v954_v44, %v2395_v55 }
 0x24b   :  { %v1323_v38 = vmul.f32 %v1210_v24, %v1099_v39 }
 0x24d   :  { %v1354_v14 = vadd.f32 %v1353_v4, %v1323_v38  ;;  %v964_v53 = vpop.f32.mrf.mxu1  ;;  %v952_v4 = vadd.f32 %v951_v57, %v2391_v1 }
 0x24e   :  { %v1038_v32 = vpop.f32.mrf.mxu2  ;;  %v965_v55 = vadd.f32 %v964_v53, %v2411_v12 }
 0x24f   :  { %v1039_v34 = vadd.f32 %v1038_v32, %v950_v60  ;;  %v957_v60 = vadd.f32 %v956_v63, %v2393_v3  ;;  %v1245_v32 = vpop.permute.xlu1 %1244 }
 0x251   :  { %v1100_v51 = vmax.f32 %v1039_v34, 0.0  ;;  %v2510_v17 = vpop.f32.mrf.mxu3  ;;  %v1250_v34 = vpop.permute.xlu2 %1249 }
 0x253   :  { %v1324_v28 = vmul.f32 %v1215_v43, %v1100_v51  ;;  %v960_v51 = vadd.f32 %v959_v22, %v2409_v36  ;;  %v1255_v36 = vpop.permute.xlu0 %1254 }
 0x255   :  { %v1355_v56 = vadd.f32 %v1354_v14, %v1324_v28  ;;  %v966_v35 = vpop.f32.mrf.mxu1 }
 0x256   :  { %v1040_v61 = vpop.f32.mrf.mxu2  ;;  %v967_v3 = vadd.f32 %v966_v35, %v2415_v5 }
 0x257   :  { %v1041_v39 = vadd.f32 %v1040_v61, %v952_v4 }
 0x259   :  { %v2512_v58 = vpop.f32.mrf.mxu3  ;;  %v1101_v43 = vmax.f32 %v1041_v39, 0.0  ;;  %v1265_v53 = vpop.permute.xlu2 %1264 }
 0x25b   :  { %v1325_v44 = vmul.f32 %v1220_v20, %v1101_v43 }
 0x25d   :  { %v969_v47 = vpop.f32.mrf.mxu1  ;;  %v1356_v39 = vadd.f32 %v1355_v56, %v1325_v44 }
 0x25e   :  { %v1043_v21 = vpop.f32.mrf.mxu2  ;;  %v970_v22 = vadd.f32 %v969_v47, %v2425_v2 }
 0x25f   :  { %v1044_v14 = vadd.f32 %v1043_v21, %v955_v46 }
 0x261   :  { %v2518_v11 = vpop.f32.mrf.mxu3  ;;  %v1102_v1 = vmax.f32 %v1044_v14, 0.0 }
 0x263   :  { %v1326_v63 = vmul.f32 %v1225_v7, %v1102_v1 }
 0x265   :  { %v971_v24 = vpop.f32.mrf.mxu1  ;;  %v1357_v20 = vadd.f32 %v1356_v39, %v1326_v63 }
 0x266   :  { %v1045_v37 = vpop.f32.mrf.mxu2  ;;  %v972_v12 = vadd.f32 %v971_v24, %v2423_v10  ;;  %v1270_v24 = vpop.permute.xlu0 %1269 }
 0x267   :  { %v1046_v28 = vadd.f32 %v1045_v37, %v957_v60 }
 0x269   :  { %v1103_v61 = vmax.f32 %v1046_v28, 0.0  ;;  %v1080_v5 = vpop.f32.mrf.mxu3 }
 0x26b   :  { %v1327_v60 = vmul.f32 %v1230_v54, %v1103_v61 }
 0x26d   :  { %v974_v37 = vpop.f32.mrf.mxu1 }
 0x26e   :  { %v1048_v52 = vpop.f32.mrf.mxu2  ;;  %v975_v35 = vadd.f32 %v974_v37, %v2433_v18  ;;  %v990_v37 = vadd.f32 %v2496_v62, %v2451_v33 }
 0x26f   :  { %v1049_v57 = vadd.f32 %v1048_v52, %v960_v51  ;;  %v1260_v52 = vpop.permute.xlu1 %1259 }
 0x271   :  { %v1104_v21 = vmax.f32 %v1049_v57, 0.0  ;;  %v1083_v63 = vpop.f32.mrf.mxu3 }
 0x275   :  { %v976_v57 = vpop.f32.mrf.mxu1 }
 0x276   :  { %v1050_v40 = vpop.f32.mrf.mxu2  ;;  %v977_v61 = vadd.f32 %v976_v57, %v2437_v15 }
 0x277   :  { %v1051_v4 = vadd.f32 %v1050_v40, %v962_v6  ;;  %v1328_v6 = vmul.f32 %v1235_v26, %v1104_v21  ;;  %v980_v26 = vadd.f32 %v2483_v8, %v2435_v27  ;;  %v1275_v44 = vpop.permute.xlu1 %1274 }
 0x279   :  { %v1105_v13 = vmax.f32 %v1051_v4, 0.0 }
 0x27b   :  { %v1329_v7 = vmul.f32 %v1240_v16, %v1105_v13  ;;  %v1280_v16 = vpop.permute.xlu2 %1279  ;;  %v992_v13 = vadd.f32 %v2500_v45, %v2456_v50 }
 0x27d   :  { %v1081_v62 = vadd.f32 %v1080_v5, %v992_v13 }
 0x27e   :  { %v1053_v48 = vpop.f32.mrf.mxu2 }
 0x27f   :  { %v1054_v46 = vadd.f32 %v1053_v48, %v965_v55  ;;  %v1358_v48 = vadd.f32 %v1357_v20, %v1327_v60 }
 0x281   :  { %v1106_v40 = vmax.f32 %v1054_v46, 0.0  ;;  %v1359_v56 = vadd.f32 %v1358_v48, %v1328_v6  ;;  %v1085_v48 = vpop.f32.mrf.mxu3 }
 0x283   :  { %v1330_v54 = vmul.f32 %v1245_v32, %v1106_v40  ;;  %v1360_v28 = vadd.f32 %v1359_v56, %v1329_v7  ;;  %v1069_v32 = vadd.f32 %v2506_v23, %v980_v26  ;;  %v2563_v40 = vld [vmem:[#allocation6_spill] sm:$0xff] }
 0x286   :  { %v1055_v19 = vpop.f32.mrf.mxu2 }
 0x287   :  { %v1056_v29 = vadd.f32 %v1055_v19, %v967_v3  ;;  %v985_v3 = vadd.f32 %v2490_v59, %v2449_v31 }
 0x289   :  { %v1107_v51 = vmax.f32 %v1056_v29, 0.0  ;;  %v1074_v23 = vadd.f32 %v2510_v17, %v985_v3  ;;  %v1290_v17 = vpop.permute.xlu1 %1289 }
 0x28b   :  { %v1331_v1 = vmul.f32 %v1250_v34, %v1107_v51 }
 0x28e   :  { %v1058_v38 = vpop.f32.mrf.mxu2 }
 0x28f   :  { %v1059_v14 = vadd.f32 %v1058_v38, %v970_v22  ;;  %v1361_v38 = vadd.f32 %v1360_v28, %v1330_v54 }
 0x291   :  { %v1108_v43 = vmax.f32 %v1059_v14, 0.0  ;;  %v1362_v4 = vadd.f32 %v1361_v38, %v1331_v1  ;;  %v2564_v14 = vld [vmem:[#allocation8_spill] sm:$0xff] }
 0x293   :  { %v1332_v55 = vmul.f32 %v1255_v36, %v1108_v43 }
 0x295   :  { %v1363_v8 = vadd.f32 %v1362_v4, %v1332_v55 }
 0x296   :  { %v1060_v41 = vpop.f32.mrf.mxu2 }
 0x297   :  { %v1061_v2 = vadd.f32 %v1060_v41, %v972_v12  ;;  %v982_v41 = vadd.f32 %v2487_v25, %v2439_v0  ;;  %v987_v0 = vadd.f32 %v2493_v42, %v2447_v30  ;;  %v1112_v25 = vmax.f32 %v1069_v32, 0.0  ;;  %v2562_v12 = vld [vmem:[#allocation7_spill] sm:$0xff] }
 0x298   :  { %v1079_v30 = vadd.f32 %v2518_v11, %v990_v37  ;;  %v1117_v11 = vmax.f32 %v1081_v62, 0.0 }
 0x299   :  { %v1109_v10 = vmax.f32 %v1061_v2, 0.0  ;;  %v1071_v27 = vadd.f32 %v2508_v9, %v982_v41  ;;  %v1076_v31 = vadd.f32 %v2512_v58, %v987_v0  ;;  %v1285_v9 = vpop.permute.xlu0 %1284  ;;  %v1336_v29 = vmul.f32 %v1275_v44, %v1112_v25  ;;  %v1295_v58 = vpop.permute.xlu2 %1294 }
 0x29a   :  { %v1116_v50 = vmax.f32 %v1079_v30, 0.0 }
 0x29b   :  { %v1333_v34 = vmul.f32 %v1260_v52, %v1109_v10  ;;  %v1113_v39 = vmax.f32 %v1071_v27, 0.0  ;;  %v1114_v52 = vmax.f32 %v1074_v23, 0.0  ;;  %v1115_v33 = vmax.f32 %v1076_v31, 0.0  ;;  %v1305_v10 = vpop.permute.xlu1 %1304 }
 0x29c   :  { %v1340_v54 = vmul.f32 %v1295_v58, %v1116_v50 }
 0x29d   :  { %v1364_v22 = vadd.f32 %v1363_v8, %v1333_v34  ;;  %v1337_v20 = vmul.f32 %v1280_v16, %v1113_v39  ;;  %v1338_v7 = vmul.f32 %v1285_v9, %v1114_v52  ;;  %v1339_v2 = vmul.f32 %v1290_v17, %v1115_v33 }
 0x29e   :  { %v1063_v47 = vpop.f32.mrf.mxu2 }
 0x29f   :  { %v1064_v19 = vadd.f32 %v1063_v47, %v975_v35  ;;  %v997_v35 = vadd.f32 %v2564_v14, %v2563_v40 }
 0x2a1   :  { %v1110_v18 = vmax.f32 %v1064_v19, 0.0  ;;  %v1086_v47 = vadd.f32 %v1085_v48, %v997_v35  ;;  %v1300_v19 = vpop.permute.xlu0 %1299  ;;  %v1310_v26 = vpop.permute.xlu2 %1309 }
 0x2a2   :  { %v1341_v28 = vmul.f32 %v1300_v19, %v1117_v11 }
 0x2a3   :  { %v1334_v46 = vmul.f32 %v1265_v53, %v1110_v18  ;;  %v995_v53 = vadd.f32 %v2562_v12, %v2454_v49  ;;  %v1119_v5 = vmax.f32 %v1086_v47, 0.0 }
 0x2a5   :  { %v1365_v59 = vadd.f32 %v1364_v22, %v1334_v46  ;;  %v1084_v45 = vadd.f32 %v1083_v63, %v995_v53  ;;  %v1343_v38 = vmul.f32 %v1310_v26, %v1119_v5 }
 0x2a6   :  { %v1065_v21 = vpop.f32.mrf.mxu2 }
 0x2a7   :  { %v1066_v36 = vadd.f32 %v1065_v21, %v977_v61  ;;  %v1118_v43 = vmax.f32 %v1084_v45, 0.0 }
 0x2a9   :  { %v1111_v15 = vmax.f32 %v1066_v36, 0.0  ;;  %v1385_v61 = vpop.permute.xlu0 %1384 }
 0x2aa   :  { %v1387_v34 = vperm.slane %v1385_v61, 0 }
 0x2ab   :  { %v1335_v60 = vmul.f32 %v1270_v24, %v1111_v15  ;;  %v1342_v24 = vmul.f32 %v1305_v10, %v1118_v43 }
 0x2ad   :  { %v1366_v42 = vadd.f32 %v1365_v59, %v1335_v60 }
 0x2af   :  { %v1367_v6 = vadd.f32 %v1366_v42, %v1336_v29 }
 0x2b1   :  { %v1368_v51 = vadd.f32 %v1367_v6, %v1337_v20 }
 0x2b3   :  { %v1369_v56 = vadd.f32 %v1368_v51, %v1338_v7 }
 0x2b5   :  { %v1370_v49 = vadd.f32 %v1369_v56, %v1339_v2 }
 0x2b7   :  { %v1371_v1 = vadd.f32 %v1370_v49, %v1340_v54 }
 0x2b9   :  { %v1372_v57 = vadd.f32 %v1371_v1, %v1341_v28 }
 0x2bb   :  { %v1373_v55 = vadd.f32 %v1372_v57, %v1342_v24 }
 0x2bd   :  { %v1374_v18 = vadd.f32 %v1373_v55, %v1343_v38 }
 0x2bf   :  { %v1375_v44 = vrot.slane %v1374_v18, 4 }
 0x2c1   :  { %v1376_v41 = vadd.f32 %v1375_v44, %v1374_v18 }
 0x2c3   :  { %v1377_v16 = vrot.slane %v1376_v41, 2 }
 0x2c5   :  { %v1378_v32 = vadd.f32 %v1377_v16, %v1376_v41 }
 0x2c7   :  { %v1379_v4 = vrot.slane %v1378_v32, 1 }
 0x2c9   :  { %v1380_v3 = vadd.f32 %v1379_v4, %v1378_v32 }
 0x2cb   :  { %v1388_v63 = vadd.f32 %v1387_v34, %v1380_v3 }
 0x2cd   :  { %1389 = vst [vmem:[#allocation3] sm:$0x1] %v1388_v63 }
 0x2ce   :  { %1400 = dma.vmem_to_hbm [thread:$0]  %s1396_s27, 16, %s1398_s30, [#allocation4]  }
 0x2cf   :  { %1708 = dma.done.wait [#allocation4], 16  }
 0x2d0   :  { %1709 = vsyncadd [#allocation4], 4294967280 }
 0x2d1   :  { %1405 = vsyncpa [#allocation4], 1 }

</bundles_post_ra>
